<compile_context>
chip_gen: v7x
topology: tpu7x:2x2x1
jax: 0.10.0
libtpu: 0.0.40
codegen_flags: <defaults>
</compile_context>

<pallas_src>
import jax
import jax.numpy as jnp
from jax import lax
from jax.experimental import pallas as pl
from jax.experimental.pallas import tpu as pltpu

_EPS = 1e-12  # F.normalize default eps


def _round_up(a, b):
    return (a + b - 1) // b * b


def _tpu_vmem_bytes():
    """Per-core VMEM capacity; conservative fallback (v7x) if unavailable."""
    try:
        cap = getattr(pltpu.get_tpu_info(), "vmem_capacity_bytes", None)
        if cap:
            return int(cap)
    except Exception:
        pass
    return 64 * 1024 * 1024


def _factor_mats(d, k, kp):
    """(d, kp) and (kp, d) 0/1 factor-indicator matrices (lane-padded to kp)."""
    dd = d // k
    rows = jnp.arange(d, dtype=jnp.int32)[:, None]
    fac = jnp.arange(kp, dtype=jnp.int32)[None, :]
    lo = fac * dd
    m = jnp.logical_and(rows >= lo, rows < lo + dd).astype(jnp.float32)
    return m, m.T


def _normalize_rows(c, m_mat, mt_mat):
    """Per-(row, factor) L2 normalize == F.normalize(x.view(n,k,dd), dim=2)."""
    sq = jnp.dot(c * c, m_mat, preferred_element_type=jnp.float32)       # (rows, kp)
    inv = lax.rsqrt(jnp.maximum(sq, _EPS * _EPS))                        # 1/max(||.||, eps)
    return c * jnp.dot(inv, mt_mat, preferred_element_type=jnp.float32)  # (rows, d)


# --------------------------------------------------------------------------
# Kernel 1: row-tiled Linear(s).  VGAE mode fuses mu (+normalize) and logvar.
# --------------------------------------------------------------------------
def _make_linear_kernel(vgae):
    if vgae:
        def kernel(x_ref, w1_ref, b1_ref, w2_ref, b2_ref, m_ref, mt_ref,
                   mu_ref, log_ref):
            x = x_ref[...]
            mu = jnp.dot(x, w1_ref[...],
                         preferred_element_type=jnp.float32) + b1_ref[...]
            mu_ref[...] = _normalize_rows(mu, m_ref[...], mt_ref[...])
            log_ref[...] = jnp.dot(x, w2_ref[...],
                                   preferred_element_type=jnp.float32) + b2_ref[...]
        return kernel

    def kernel(x_ref, w1_ref, b1_ref, m_ref, mt_ref, mu_ref):
        x = x_ref[...]
        mu = jnp.dot(x, w1_ref[...],
                     preferred_element_type=jnp.float32) + b1_ref[...]
        mu_ref[...] = _normalize_rows(mu, m_ref[...], mt_ref[...])
    return kernel


def _linear(x_p, w1, b1, w2, b2, m_mat, mt_mat, *, tile_n, vmem_limit):
    n_pad, in_dim = x_p.shape
    d = int(w1.shape[0])
    kp = int(m_mat.shape[1])
    vgae = w2 is not None

    wt1 = jnp.asarray(w1, jnp.float32).T                 # (in_dim, d)
    b1r = jnp.asarray(b1, jnp.float32).reshape(1, d)

    in_specs = [pl.BlockSpec((tile_n, in_dim), lambda i: (i, 0)),
                pl.BlockSpec((in_dim, d), lambda i: (0, 0)),
                pl.BlockSpec((1, d), lambda i: (0, 0))]
    args = [x_p, wt1, b1r]
    if vgae:
        wt2 = jnp.asarray(w2, jnp.float32).T
        b2r = jnp.asarray(b2, jnp.float32).reshape(1, d)
        in_specs += [pl.BlockSpec((in_dim, d), lambda i: (0, 0)),
                     pl.BlockSpec((1, d), lambda i: (0, 0))]
        args += [wt2, b2r]
    in_specs += [pl.BlockSpec((d, kp), lambda i: (0, 0)),
                 pl.BlockSpec((kp, d), lambda i: (0, 0))]
    args += [m_mat, mt_mat]

    if vgae:
        out_specs = (pl.BlockSpec((tile_n, d), lambda i: (i, 0)),
                     pl.BlockSpec((tile_n, d), lambda i: (i, 0)))
        out_shape = (jax.ShapeDtypeStruct((n_pad, d), jnp.float32),
                     jax.ShapeDtypeStruct((n_pad, d), jnp.float32))
    else:
        out_specs = pl.BlockSpec((tile_n, d), lambda i: (i, 0))
        out_shape = jax.ShapeDtypeStruct((n_pad, d), jnp.float32)

    return pl.pallas_call(
        _make_linear_kernel(vgae),
        grid=(n_pad // tile_n,),
        in_specs=in_specs,
        out_specs=out_specs,
        out_shape=out_shape,
        compiler_params=pltpu.CompilerParams(
            dimension_semantics=("parallel",),
            vmem_limit_bytes=vmem_limit),
    )(*args)


# --------------------------------------------------------------------------
# Kernel 2: routing layer on a (routit, edge_tiles) grid with resident c.
# --------------------------------------------------------------------------
def _make_routing_kernel(k, kp, d, n_pad):
    def kernel(trg_ref, z_ref, c0_ref, m_ref, mt_ref, o_ref, delta_ref):
        t = pl.program_id(0)            # routing iteration
        e = pl.program_id(1)            # edge tile
        last_e = pl.num_programs(1) - 1

        @pl.when(jnp.logical_and(t == 0, e == 0))
        def _init_c():
            o_ref[...] = c0_ref[...]    # c <- normalized linear output

        m_mat = m_ref[...]
        mt_mat = mt_ref[...]

        c = o_ref[...]                  # evolving c (frozen within iteration t)
        z = z_ref[...]                  # c0[src] for this edge tile (hoisted)
        trg = trg_ref[...]              # (tile_m, 1) int32; padded edges = -1
        tile_m = z.shape[0]

        # Single in-register selection matrix per step (no (m, n) HBM arrays).
        lane_nodes = lax.broadcasted_iota(jnp.int32, (tile_m, n_pad), 1)
        oh_trg = (lane_nodes == trg).astype(jnp.float32)          # (tile_m, n_pad)

        # Gather: ct = c[trg]   (exact: 0/1 weights, f32 accumulation).
        ct = jnp.dot(oh_trg, c, preferred_element_type=jnp.float32)

        # Routing weights (lane-dense kp columns, padded lanes -> -inf).
        p = jnp.dot(z * ct, m_mat, preferred_element_type=jnp.float32)
        lane_k = lax.broadcasted_iota(jnp.int32, (1, kp), 1)
        p = jnp.where(lane_k < k, p, -jnp.inf)
        p = p - jnp.max(p, axis=-1, keepdims=True)
        ep = jnp.exp(p)
        p = ep * pl.reciprocal(jnp.sum(ep, axis=-1, keepdims=True), approx=True)

        w = jnp.dot(p, mt_mat, preferred_element_type=jnp.float32) * z   # (tile_m, d)

        # Scatter-add over edges as a transposed contraction (reuses oh_trg,
        # duplicates in trg are summed; padded edges contribute 0).
        scatter = lax.dot_general(oh_trg, w, (((0,), (0,)), ((), ())),
                                  preferred_element_type=jnp.float32)    # (n_pad, d)

        @pl.when(e == 0)
        def _store_delta():
            delta_ref[...] = scatter

        @pl.when(e > 0)
        def _accum_delta():
            delta_ref[...] += scatter

        @pl.when(e == last_e)
        def _apply():
            o_ref[...] = _normalize_rows(o_ref[...] + delta_ref[...],
                                         m_mat, mt_mat)

    return kernel


def _routing(c0, z_all, trg_p, m_mat, mt_mat, *, k, kp, routit, tile_m,
             vmem_limit):
    n_pad, d = c0.shape
    m_pad = z_all.shape[0]
    n_eb = m_pad // tile_m
    trg_col = trg_p.reshape(m_pad, 1)
    return pl.pallas_call(
        _make_routing_kernel(k, kp, d, n_pad),
        grid=(routit, n_eb),
        in_specs=[pl.BlockSpec((tile_m, 1), lambda t, e: (e, 0)),   # trg
                  pl.BlockSpec((tile_m, d), lambda t, e: (e, 0)),   # z = c0[src]
                  pl.BlockSpec((n_pad, d), lambda t, e: (0, 0)),    # c0 (init)
                  pl.BlockSpec((d, kp), lambda t, e: (0, 0)),       # m_mat
                  pl.BlockSpec((kp, d), lambda t, e: (0, 0))],      # mt_mat
        out_specs=pl.BlockSpec((n_pad, d), lambda t, e: (0, 0)),
        out_shape=jax.ShapeDtypeStruct((n_pad, d), jnp.float32),
        scratch_shapes=[pltpu.VMEM((n_pad, d), jnp.float32)],
        compiler_params=pltpu.CompilerParams(
            dimension_semantics=("arbitrary", "arbitrary"),
            vmem_limit_bytes=vmem_limit),
    )(trg_col, z_all, c0, m_mat, mt_mat)


# --------------------------------------------------------------------------
# Public wrapper (matches Disen_Linear.forward)
# --------------------------------------------------------------------------
def disen_linear_forward(x, edge_index, params, *, k, routit, model):
    x = jnp.asarray(x, jnp.float32)
    n, in_dim = x.shape
    w = jnp.asarray(params["W"], jnp.float32)            # (d, in_dim)
    b = jnp.asarray(params["b"], jnp.float32)            # (d,)
    d = int(w.shape[0])
    assert d % k == 0, "k must divide the output dimension"
    kp = _round_up(k, 128)

    vmem_cap = _tpu_vmem_bytes()
    vmem_limit = min(max(32 * 1024 * 1024, int(vmem_cap * 0.65)),
                     100 * 1024 * 1024)

    # Row tiling for the Linear kernel / residency in routing.
    tile_n = min(1024, _round_up(n, 8))
    n_pad = _round_up(n, tile_n)
    x_p = jnp.zeros((n_pad, in_dim), jnp.float32).at[:n, :].set(x)

    m_mat, mt_mat = _factor_mats(d, k, kp)

    if model == "VGAE":
        c0, logv = _linear(x_p, w, b, params["W_"], params["b_"],
                           m_mat, mt_mat, tile_n=tile_n, vmem_limit=vmem_limit)
    else:
        c0 = _linear(x_p, w, b, None, None, m_mat, mt_mat,
                     tile_n=tile_n, vmem_limit=vmem_limit)
        logv = None

    src = jnp.asarray(edge_index[0], jnp.int32)
    trg = jnp.asarray(edge_index[1], jnp.int32)
    m_edges = int(src.shape[0])

    if routit > 0 and m_edges > 0:
        # Edge tiling: ONE (tile_m, n_pad) selection matrix per step now, so
        # the budget buys ~3x larger tiles than before.  Generation aware.
        sel_budget = min(24 * 1024 * 1024, max(6 * 1024 * 1024, vmem_cap // 6))
        cap_m = (sel_budget // max(1, n_pad * 4)) // 128 * 128
        cap_m = max(cap_m, 128)  # TODO(synk): DMA row-gather path for huge n
        tile_m = max(128, min(2048, cap_m, _round_up(m_edges, 128)))
        m_pad = _round_up(m_edges, tile_m)

        # Padded edges: trg = -1 (matches no node -> zero row), src = 0.
        src_p = jnp.zeros((m_pad,), jnp.int32).at[:m_edges].set(src)
        trg_p = jnp.full((m_pad,), -1, jnp.int32).at[:m_edges].set(trg)

        # z = c0[src] is invariant across routing iterations: gather it once.
        z_all = jnp.take(c0, src_p, axis=0)               # (m_pad, d)

        c = _routing(c0, z_all, trg_p, m_mat, mt_mat, k=k, kp=kp,
                     routit=routit, tile_m=tile_m, vmem_limit=vmem_limit)
    else:
        c = c0

    c = c[:n]
    if model == "VGAE":
        return c, logv[:n]
    return c


# --------------------------------------------------------------------------
# Pure-JAX reference mirroring the PyTorch module exactly
# --------------------------------------------------------------------------
def _reference(x, edge_index, params, *, k, routit, model):
    W, b = params["W"], params["b"]
    n, _ = x.shape
    d = W.shape[0]
    dd = d // k

    def normalize(c):
        c3 = c.reshape(n, k, dd)
        nrm = jnp.maximum(jnp.linalg.norm(c3, axis=2, keepdims=True), _EPS)
        return (c3 / nrm).reshape(n, d)

    def route(h):
        src, trg = edge_index[0], edge_index[1]
        m = src.shape[0]
        h = normalize(h)
        z = h[src].reshape(m, k, dd)
        c = h
        for _ in range(routit):
            p = (z * c[trg].reshape(m, k, dd)).sum(axis=2)
            p = jax.nn.softmax(p, axis=1)
            w = (p[:, :, None] * z).reshape(m, d)
            c = c.at[trg].add(w)
            c = normalize(c)
        return c

    mu = route(x @ W.T + b)
    if model == "VGAE":
        return mu, x @ params["W_"].T + params["b_"]
    return mu


if __name__ == "__main__":
    key = jax.random.PRNGKey(0)
    n, in_dim, k_factors, x_dim, routit = 16, 32, 4, 8, 3
    m = 24
    d = k_factors * x_dim

    k1, k2, k3, k4, k5, k6, k7 = jax.random.split(key, 7)
    x = jax.random.normal(k1, (n, in_dim), dtype=jnp.float32)
    src = jax.random.randint(k2, (m,), 0, n, dtype=jnp.int32)
    trg = jax.random.randint(k3, (m,), 0, n, dtype=jnp.int32)
    edge_index = jnp.stack([src, trg])

    lim = 1.0 / float(jnp.sqrt(in_dim))
    params = {
        "W":  jax.random.uniform(k4, (d, in_dim), minval=-lim, maxval=lim, dtype=jnp.float32),
        "b":  jax.random.uniform(k5, (d,),        minval=-lim, maxval=lim, dtype=jnp.float32),
        "W_": jax.random.uniform(k6, (d, in_dim), minval=-lim, maxval=lim, dtype=jnp.float32),
        "b_": jax.random.uniform(k7, (d,),        minval=-lim, maxval=lim, dtype=jnp.float32),
    }

    mu, log = disen_linear_forward(x, edge_index, params,
                                   k=k_factors, routit=routit, model="VGAE")
    jax.block_until_ready((mu, log))

    mu_ref, log_ref = _reference(x, edge_index, params,
                                 k=k_factors, routit=routit, model="VGAE")
    assert jnp.allclose(mu, mu_ref, atol=3e-3, rtol=3e-3), \
        float(jnp.max(jnp.abs(mu - mu_ref)))
    assert jnp.allclose(log, log_ref, atol=3e-3, rtol=3e-3), \
        float(jnp.max(jnp.abs(log - log_ref)))

    # Also exercise GAE mode once.
    c_gae = disen_linear_forward(x, edge_index, params,
                                 k=k_factors, routit=routit, model="GAE")
    jax.block_until_ready(c_gae)
    c_gae_ref = _reference(x, edge_index, params,
                           k=k_factors, routit=routit, model="GAE")
    assert jnp.allclose(c_gae, c_gae_ref, atol=3e-3, rtol=3e-3), \
        float(jnp.max(jnp.abs(c_gae - c_gae_ref)))

    print("KERNEL_OK")
</pallas_src>

<mosaic_0001>
module attributes {stable_mosaic.version = 11 : i64} {
  func.func @kernel(%arg0: i32, %arg1: memref<16x32xf32, #tpu.memory_space<vmem>>, %arg2: memref<32x32xf32, #tpu.memory_space<vmem>>, %arg3: memref<1x32xf32, #tpu.memory_space<vmem>>, %arg4: memref<32x32xf32, #tpu.memory_space<vmem>>, %arg5: memref<1x32xf32, #tpu.memory_space<vmem>>, %arg6: memref<32x128xf32, #tpu.memory_space<vmem>>, %arg7: memref<128x32xf32, #tpu.memory_space<vmem>>, %arg8: memref<16x32xf32, #tpu.memory_space<vmem>>, %arg9: memref<16x32xf32, #tpu.memory_space<vmem>>) attributes {dimension_semantics = [#tpu.dimension_semantics<parallel>], iteration_bounds = array<i64: 1>, scalar_prefetch = 0 : i64, scratch_operands = 0 : i64, tpu.core_type = #tpu.core_type<tc>, window_params = [{transform_indices = @transform_0, window_bounds = array<i64: 16, 32>}, {pipeline_mode = #tpu.pipeline_mode<synchronous>, transform_indices = @transform_1, window_bounds = array<i64: 32, 32>}, {pipeline_mode = #tpu.pipeline_mode<synchronous>, transform_indices = @transform_2, window_bounds = array<i64: 1, 32>}, {pipeline_mode = #tpu.pipeline_mode<synchronous>, transform_indices = @transform_3, window_bounds = array<i64: 32, 32>}, {pipeline_mode = #tpu.pipeline_mode<synchronous>, transform_indices = @transform_4, window_bounds = array<i64: 1, 32>}, {pipeline_mode = #tpu.pipeline_mode<synchronous>, transform_indices = @transform_5, window_bounds = array<i64: 32, 128>}, {pipeline_mode = #tpu.pipeline_mode<synchronous>, transform_indices = @transform_6, window_bounds = array<i64: 128, 32>}, {transform_indices = @transform_7, window_bounds = array<i64: 16, 32>}, {transform_indices = @transform_8, window_bounds = array<i64: 16, 32>}]} {
    %c0 = arith.constant 0 : index
    %c0_0 = arith.constant 0 : index
    %0 = vector.load %arg1[%c0, %c0_0] : memref<16x32xf32, #tpu.memory_space<vmem>>, vector<16x32xf32>
    %c0_1 = arith.constant 0 : index
    %c0_2 = arith.constant 0 : index
    %1 = vector.load %arg2[%c0_1, %c0_2] : memref<32x32xf32, #tpu.memory_space<vmem>>, vector<32x32xf32>
    %cst = arith.constant dense<0.000000e+00> : vector<16x32xf32>
    %2 = tpu.matmul %0, %1, %cst {dimension_numbers = #tpu.dot_dimension_numbers<[1], [0], [0], [1], [0, 0, 1, 1], [], []>} : vector<16x32xf32>, vector<32x32xf32>, vector<16x32xf32> -> vector<16x32xf32>
    %c0_3 = arith.constant 0 : index
    %c0_4 = arith.constant 0 : index
    %3 = vector.load %arg3[%c0_3, %c0_4] : memref<1x32xf32, #tpu.memory_space<vmem>>, vector<1x32xf32>
    %4 = vector.broadcast %3 : vector<1x32xf32> to vector<16x32xf32>
    %5 = arith.addf %2, %4 : vector<16x32xf32>
    %c0_5 = arith.constant 0 : index
    %c0_6 = arith.constant 0 : index
    %6 = vector.load %arg6[%c0_5, %c0_6] : memref<32x128xf32, #tpu.memory_space<vmem>>, vector<32x128xf32>
    %c0_7 = arith.constant 0 : index
    %c0_8 = arith.constant 0 : index
    %7 = vector.load %arg7[%c0_7, %c0_8] : memref<128x32xf32, #tpu.memory_space<vmem>>, vector<128x32xf32>
    %8 = arith.mulf %5, %5 : vector<16x32xf32>
    %cst_9 = arith.constant dense<0.000000e+00> : vector<16x128xf32>
    %9 = tpu.matmul %8, %6, %cst_9 {dimension_numbers = #tpu.dot_dimension_numbers<[1], [0], [0], [1], [0, 0, 1, 1], [], []>} : vector<16x32xf32>, vector<32x128xf32>, vector<16x128xf32> -> vector<16x128xf32>
    %cst_10 = arith.constant 1.000000e-24 : f32
    %10 = vector.broadcast %cst_10 : f32 to vector<16x128xf32>
    %11 = arith.maximumf %9, %10 : vector<16x128xf32>
    %12 = math.rsqrt %11 : vector<16x128xf32>
    %cst_11 = arith.constant dense<0.000000e+00> : vector<16x32xf32>
    %13 = tpu.matmul %12, %7, %cst_11 {dimension_numbers = #tpu.dot_dimension_numbers<[1], [0], [0], [1], [0, 0, 1, 1], [], []>} : vector<16x128xf32>, vector<128x32xf32>, vector<16x32xf32> -> vector<16x32xf32>
    %14 = arith.mulf %5, %13 : vector<16x32xf32>
    %c0_12 = arith.constant 0 : index
    %c0_13 = arith.constant 0 : index
    %15 = vector.load %arg8[%c0_12, %c0_13] : memref<16x32xf32, #tpu.memory_space<vmem>>, vector<16x32xf32>
    tpu.vector_store %arg8[%c0_12, %c0_13], %14 {strides = array<i32>} : memref<16x32xf32, #tpu.memory_space<vmem>>, vector<16x32xf32>,
    %c0_14 = arith.constant 0 : index
    %c0_15 = arith.constant 0 : index
    %16 = vector.load %arg4[%c0_14, %c0_15] : memref<32x32xf32, #tpu.memory_space<vmem>>, vector<32x32xf32>
    %cst_16 = arith.constant dense<0.000000e+00> : vector<16x32xf32>
    %17 = tpu.matmul %0, %16, %cst_16 {dimension_numbers = #tpu.dot_dimension_numbers<[1], [0], [0], [1], [0, 0, 1, 1], [], []>} : vector<16x32xf32>, vector<32x32xf32>, vector<16x32xf32> -> vector<16x32xf32>
    %c0_17 = arith.constant 0 : index
    %c0_18 = arith.constant 0 : index
    %18 = vector.load %arg5[%c0_17, %c0_18] : memref<1x32xf32, #tpu.memory_space<vmem>>, vector<1x32xf32>
    %19 = vector.broadcast %18 : vector<1x32xf32> to vector<16x32xf32>
    %20 = arith.addf %17, %19 : vector<16x32xf32>
    %c0_19 = arith.constant 0 : index
    %c0_20 = arith.constant 0 : index
    %21 = vector.load %arg9[%c0_19, %c0_20] : memref<16x32xf32, #tpu.memory_space<vmem>>, vector<16x32xf32>
    tpu.vector_store %arg9[%c0_19, %c0_20], %20 {strides = array<i32>} : memref<16x32xf32, #tpu.memory_space<vmem>>, vector<16x32xf32>,
    return
  }
  func.func @transform_0(%arg0: i32) -> (i32, i32) {
    %c0_i32 = arith.constant 0 : i32
    %c0_i32_0 = arith.constant 0 : i32
    return %arg0, %c0_i32 : i32, i32
  }
  func.func @transform_1(%arg0: i32) -> (i32, i32) {
    %c0_i32 = arith.constant 0 : i32
    %c0_i32_0 = arith.constant 0 : i32
    %c0_i32_1 = arith.constant 0 : i32
    return %c0_i32, %c0_i32_0 : i32, i32
  }
  func.func @transform_2(%arg0: i32) -> (i32, i32) {
    %c0_i32 = arith.constant 0 : i32
    %c0_i32_0 = arith.constant 0 : i32
    %c0_i32_1 = arith.constant 0 : i32
    return %c0_i32, %c0_i32_0 : i32, i32
  }
  func.func @transform_3(%arg0: i32) -> (i32, i32) {
    %c0_i32 = arith.constant 0 : i32
    %c0_i32_0 = arith.constant 0 : i32
    %c0_i32_1 = arith.constant 0 : i32
    return %c0_i32, %c0_i32_0 : i32, i32
  }
  func.func @transform_4(%arg0: i32) -> (i32, i32) {
    %c0_i32 = arith.constant 0 : i32
    %c0_i32_0 = arith.constant 0 : i32
    %c0_i32_1 = arith.constant 0 : i32
    return %c0_i32, %c0_i32_0 : i32, i32
  }
  func.func @transform_5(%arg0: i32) -> (i32, i32) {
    %c0_i32 = arith.constant 0 : i32
    %c0_i32_0 = arith.constant 0 : i32
    %c0_i32_1 = arith.constant 0 : i32
    return %c0_i32, %c0_i32_0 : i32, i32
  }
  func.func @transform_6(%arg0: i32) -> (i32, i32) {
    %c0_i32 = arith.constant 0 : i32
    %c0_i32_0 = arith.constant 0 : i32
    %c0_i32_1 = arith.constant 0 : i32
    return %c0_i32, %c0_i32_0 : i32, i32
  }
  func.func @transform_7(%arg0: i32) -> (i32, i32) {
    %c0_i32 = arith.constant 0 : i32
    %c0_i32_0 = arith.constant 0 : i32
    return %arg0, %c0_i32 : i32, i32
  }
  func.func @transform_8(%arg0: i32) -> (i32, i32) {
    %c0_i32 = arith.constant 0 : i32
    %c0_i32_0 = arith.constant 0 : i32
    return %arg0, %c0_i32 : i32, i32
  }
}

</mosaic_0001>

<bundles_post_ra>
// kernel: tpu_custom_call.1
= control target key start
LH: loop header
LB: loop body
LE: loop exit
PB: predicated region body
PF: predicated region fallthrough
CT: control target
= control target key end

     0   :  { %14 = vsyncpa [#allocation3], 0  ;;  %vm43_vm0 = vcmask 261120   ;;  %s848_s0 = inlined_call_operand.vmem [shape: f32[16,32], index: 0, kind: input, shape index: {}]   ;;  %s849_s1 = inlined_call_operand.vmem [shape: f32[32,32], index: 1, kind: input, shape index: {}]   ;;  %s850_s2 = inlined_call_operand.vmem [shape: f32[1,32], index: 2, kind: input, shape index: {}]   ;;  %s851_s3 = inlined_call_operand.vmem [shape: f32[32,32], index: 3, kind: input, shape index: {}]   ;;  %s852_s4 = inlined_call_operand.vmem [shape: f32[1,32], index: 4, kind: input, shape index: {}]   ;;  %s853_s5 = inlined_call_operand.vmem [shape: f32[32,128], index: 5, kind: input, shape index: {}]   ;;  %s854_s6 = inlined_call_operand.vmem [shape: f32[128,32], index: 6, kind: input, shape index: {}]   ;;  %s855_s7 = inlined_call_operand.hbm [shape: f32[16,32], index: 7, kind: output, shape index: {0}]   ;;  %s856_s8 = inlined_call_operand.hbm [shape: f32[16,32], index: 8, kind: output, shape index: {1}]  }
   0x1   :  { %v32_v0 = vld [vmem:[%s849_s1] sm:$0xff]  ;;  %v33_v1 = vld [vmem:[%s849_s1 + $0x8] sm:$0xff]  ;;  %v34_v2 = vld [vmem:[%s849_s1 + $0x10] sm:$0xff] }
   0x2   :  { %v543_v3 = vpack.c.bf16 %v33_v1, %v32_v0  ;;  %v35_v4 = vld [vmem:[%s849_s1 + $0x18] sm:$0xff]  ;;  %v30_v5 = vld [vmem:[%s848_s0] sm:$0xff]  ;;  %v126_v8 = vld [vmem:[%s853_s5 + $0x8] sm:$0xff] }
   0x3   :  { %v547_v6 = vpack.c.bf16 %v35_v4, %v34_v2  ;;  %483 = vmatprep.mubr.msk.f32.mxu1 %vm43_vm0, %v30_v5  ;;  %v125_v7 = vld [vmem:[%s853_s5] sm:$0xff] }
   0x4   :  { %15 = vsyncpa [#allocation5], 0  ;;  %544 = vmatprep.subr.bf16.mxu1 %v543_v3  ;;  %v551_v9 = vpack.c.bf16 %v126_v8, %v125_v7  ;;  %v729_v10 = vld [vmem:[%s848_s0 + $0x8] sm:$0xff]  ;;  %v127_v11 = vld [vmem:[%s853_s5 + $0x10] sm:$0xff]  ;;  %s655_s16 = smov [#allocation4]  }
   0x5   :  { %546 = vmatpush3.bf16.msra.mxu1 %v543_v3  ;;  %v128_v12 = vld [vmem:[%s853_s5 + $0x18] sm:$0xff]  ;;  %v129_v14 = vld [vmem:[%s854_s6] sm:$0xff]  ;;  %v130_v15 = vld [vmem:[%s854_s6 + $0x8] sm:$0xff]  ;;  %s416_s17 = sshll.u32 %s655_s16, 4  ;;  %s417_s17 = int_to_ptr.vmem [resolvable:$true] %s416_s17 }
   0x6   :  { %548 = vmatprep.subr.bf16.mxu1 %v547_v6  ;;  %v555_v13 = vpack.c.bf16 %v128_v12, %v127_v11  ;;  %v131_v16 = vld [vmem:[%s854_s6 + $0x10] sm:$0xff]  ;;  %v559_v17 = vpack.c.bf16 %v130_v15, %v129_v14  ;;  %v132_v18 = vld [vmem:[%s854_s6 + $0x18] sm:$0xff]  ;;  %v133_v20 = vld [vmem:[%s854_s6 + $0x20] sm:$0xff]  ;;  %s607_s18 = scalar_lea.vmem %s417_s17, 256  ;;  %p612_p1 = scmp.lt.s32.totalorder %s417_s17, %s417_s17 }
   0x7   :  { %v563_v19 = vpack.c.bf16 %v132_v18, %v131_v16  ;;  %v134_v21 = vld [vmem:[%s854_s6 + $0x28] sm:$0xff]  ;;  %v135_v23 = vld [vmem:[%s854_s6 + $0x30] sm:$0xff]  ;;  %v136_v24 = vld [vmem:[%s854_s6 + $0x38] sm:$0xff]  ;;  %p608_p0 = scmp.ne.s32.totalorder %s417_s17, %s607_s18  ;;  %p613_p2 = scmp.lt.s32.totalorder %s607_s18, %s607_s18 }
   0x8   :  { %560 = vmatprep.subr.bf16.mxu0 %v559_v17  ;;  %v567_v22 = vpack.c.bf16 %v134_v21, %v133_v20  ;;  %v571_v25 = vpack.c.bf16 %v136_v24, %v135_v23  ;;  %v431_v26 = vld [vmem:[%s850_s2] ss:$0 sm:$0xff]  ;;  %v138_v34 = vld [vmem:[%s854_s6 + $0x48] sm:$0xff]  ;;  %v139_v36 = vld [vmem:[%s854_s6 + $0x50] sm:$0xff] }
   0x9   :  { %550 = vmatpush3.bf16.msra.mxu1 %v547_v6  ;;  %562 = vmatpush3.bf16.msra.mxu0 %v559_v17  ;;  %v137_v33 = vld [vmem:[%s854_s6 + $0x40] sm:$0xff]  ;;  %v140_v37 = vld [vmem:[%s854_s6 + $0x58] sm:$0xff]  ;;  %v312_v40 = vld [vmem:[%s851_s3 + $0x8] sm:$0xff]  ;;  %p614_p3 = por %p613_p2, %p612_p1 }
   0xa   :  { %552 = vmatprep.subr.bf16.mxu1 %v551_v9  ;;  %564 = vmatprep.subr.bf16.mxu0 %v563_v19  ;;  %v575_v35 = vpack.c.bf16 %v138_v34, %v137_v33  ;;  %v579_v38 = vpack.c.bf16 %v140_v37, %v139_v36  ;;  %v311_v39 = vld [vmem:[%s851_s3] sm:$0xff]  ;;  %v142_v43 = vld [vmem:[%s854_s6 + $0x68] sm:$0xff]  ;;  %v313_v44 = vld [vmem:[%s851_s3 + $0x10] sm:$0xff] }
   0xb   :  { %v141_v41 = vld [vmem:[%s854_s6 + $0x60] sm:$0xff]  ;;  %v591_v42 = vpack.c.bf16 %v312_v40, %v311_v39  ;;  %v314_v45 = vld [vmem:[%s851_s3 + $0x18] sm:$0xff]  ;;  %v143_v48 = vld [vmem:[%s854_s6 + $0x70] sm:$0xff]  ;;  %p615_p4 = pnand %p614_p3, %p608_p0 }
   0xc   :  { %484 = vmatmul.mubr.msk.f32.vlgmr.msra.gmra.mrb[0].mxu1 %vm43_vm0, %v729_v10  ;;  %v583_v46 = vpack.c.bf16 %v142_v43, %v141_v41  ;;  %v595_v47 = vpack.c.bf16 %v314_v45, %v313_v44  ;;  %v144_v49 = vld [vmem:[%s854_s6 + $0x78] sm:$0xff]  ;;  %v436_v57 = vld [vmem:[%s852_s4] ss:$0 sm:$0xff] }
   0xd   :  { %554 = vmatpush3.bf16.msra.mxu1 %v551_v9  ;;  %566 = vmatpush3.bf16.msra.mxu0 %v563_v19  ;;  %v587_v50 = vpack.c.bf16 %v144_v49, %v143_v48 }
   0xe   :  { %556 = vmatprep.subr.bf16.mxu1 %v555_v13  ;;  %568 = vmatprep.subr.bf16.mxu0 %v567_v22 }
  0x11   :  { %558 = vmatpush3.bf16.msra.mxu1 %v555_v13  ;;  %570 = vmatpush3.bf16.msra.mxu0 %v567_v22 }
  0x12   :  { %572 = vmatprep.subr.bf16.mxu0 %v571_v25  ;;  %592 = vmatprep.subr.bf16.mxu1 %v591_v42 }
  0x15   :  { %574 = vmatpush3.bf16.msra.mxu0 %v571_v25 }
  0x16   :  { %576 = vmatprep.subr.bf16.mxu0 %v575_v35 }
  0x19   :  { %578 = vmatpush3.bf16.msra.mxu0 %v575_v35 }
  0x1a   :  { %580 = vmatprep.subr.bf16.mxu0 %v579_v38 }
  0x1d   :  { %582 = vmatpush3.bf16.msra.mxu0 %v579_v38 }
  0x1e   :  { %584 = vmatprep.subr.bf16.mxu0 %v583_v46 }
  0x21   :  { %586 = vmatpush3.bf16.msra.mxu0 %v583_v46 }
  0x22   :  { %588 = vmatprep.subr.bf16.mxu0 %v587_v50 }
  0x25   :  { %590 = vmatpush3.bf16.msra.mxu0 %v587_v50 }
  0xdf   :  { %v485_v27 = vpop.f32.mrb[0].mxu1 }
  0xe0   :  { %v766_v28 = vadd.f32 %v485_v27, %v431_v26  ;;  %v116_v29 = vpop.f32.mrb[1].mxu1 }
  0xe1   :  { %v768_v30 = vadd.f32 %v431_v26, %v116_v29 }
  0xe2   :  { %v146_v32 = vmul.f32 %v766_v28, %v766_v28 }
  0xe3   :  { %v145_v31 = vmul.f32 %v768_v30, %v768_v30 }
  0xe5   :  { %494 = vmatprep.mubr.msk.f32.mxu1 %vm43_vm0, %v145_v31 }
  0xe6   :  { %495 = vmatmul.mubr.msk.f32.vlgmr.msra.gmra.mrb[2].mxu1 %vm43_vm0, %v146_v32 }
  0xe7   :  { %540 = vmatprep.mubr.msk.f32.mxu1 %vm43_vm0, %v30_v5  ;;  %594 = vmatpush3.bf16.msra.mxu1 %v591_v42 }
  0xe8   :  { %596 = vmatprep.subr.bf16.mxu1 %v595_v47 }
  0xeb   :  { %598 = vmatpush3.bf16.msra.mxu1 %v595_v47 }
  0xee   :  { %541 = vmatmul.mubr.msk.f32.vlgmr.msra.gmra.mrb[4].mxu1 %vm43_vm0, %v729_v10 }
 0x1b9   :  { %v496_v51 = vpop.f32.mrb[2].mxu1 }
 0x1ba   :  { %v229_v52 = vmax.f32 %v496_v51, 1e-24  ;;  %v219_v53 = vpop.f32.mrb[3].mxu1 }
 0x1bb   :  { %v228_v54 = vmax.f32 %v219_v53, 1e-24 }
 0x1bd   :  { %603 = vrsqrt.f32 %v228_v54 }
 0x1be   :  { %605 = vrsqrt.f32 %v229_v52 }
 0x1c1   :  { %v542_v58 = vpop.f32.mrb[4].mxu1 }
 0x1c2   :  { %v394_v59 = vadd.f32 %v542_v58, %v436_v57  ;;  %v388_v60 = vpop.f32.mrb[5].mxu1 }
 0x1c3   :  { %v389_v61 = vadd.f32 %v436_v57, %v388_v60 }
 0x1c4   :  { %398 = vst.msk [vmem:[#allocation4 + $0x8] sm:$0xff] %vm43_vm0, %v394_v59 }
 0x1c5   :  { %397 = vst.msk [vmem:[#allocation4] sm:$0xff] %vm43_vm0, %v389_v61 }
 0x1c7   :  { %v604_v55 = vpop.eup %603 }
 0x1c8   :  { %v606_v56 = vpop.eup %605  ;;  %529 = vmatprep.mubr.f32.mxu0 %v604_v55 }
 0x1c9   :  { %530 = vmatmul.mubr.f32.vlgmr.msra.gmra.mrb[0].mxu0 %v606_v56 }
 0x1ca   :  { %618 = shalt.err (!%p615_p4)
}
 0x1cb   :  { %s619_s1 = scalar_lea.hbm %s856_s8, 256 }
 0x1cc   :  { %p620_p5 = scmp.ne.s32.totalorder %s856_s8, %s619_s1  ;;  %p623_p6 = scmp.lt.u32.totalorder %s619_s1, %s856_s8 }
 0x1ce   :  { %p625_p7 = pnand %p623_p6, %p620_p5 }
 0x1d0   :  { %628 = shalt.err (!%p625_p7)
}
 0x1d1   :  { %s656_s23 = smov 128   ;;  %s657_s24 = smov 8  }
 0x1d2   :  { %422 = dma.vmem_to_hbm [thread:$0]  %s417_s17, 256, %s856_s8, [#allocation5], %s656_s23, %s656_s23, %s657_s24  }
 0x1d3   :  { %s658_s26 = smov [#allocation2]  }
 0x1d4   :  { %s404_s27 = sshll.u32 %s658_s26, 4  ;;  %s405_s27 = int_to_ptr.vmem [resolvable:$true] %s404_s27 }
 0x1d5   :  { %s629_s28 = scalar_lea.vmem %s405_s27, 256  ;;  %p634_p9 = scmp.lt.s32.totalorder %s405_s27, %s405_s27 }
 0x1d6   :  { %p630_p8 = scmp.ne.s32.totalorder %s405_s27, %s629_s28  ;;  %p635_p10 = scmp.lt.s32.totalorder %s629_s28, %s629_s28 }
 0x1d8   :  { %p636_p11 = por %p635_p10, %p634_p9 }
 0x1da   :  { %p637_p12 = pnand %p636_p11, %p630_p8 }
 0x29c   :  { %v531_v62 = vpop.f32.mrb[0].mxu0 }
 0x29d   :  { %v308_v63 = vmul.f32 %v531_v62, %v766_v28  ;;  %v298_v0 = vpop.f32.mrb[1].mxu0 }
 0x29e   :  { %v307_v1 = vmul.f32 %v298_v0, %v768_v30 }
 0x29f   :  { %310 = vst.msk [vmem:[#allocation2 + $0x8] sm:$0xff] %vm43_vm0, %v308_v63 }
 0x2a0   :  { %309 = vst.msk [vmem:[#allocation2] sm:$0xff] %vm43_vm0, %v307_v1 }
 0x2a1   :  { %640 = shalt.err (!%p637_p12)
}
 0x2a2   :  { %s641_s30 = scalar_lea.hbm %s855_s7, 256 }
 0x2a3   :  { %p642_p13 = scmp.ne.s32.totalorder %s855_s7, %s641_s30  ;;  %p645_p0 = scmp.lt.u32.totalorder %s641_s30, %s855_s7 }
 0x2a5   :  { %p647_p1 = pnand %p645_p0, %p642_p13 }
 0x2a7   :  { %650 = shalt.err (!%p647_p1)
}
 0x2a8   :  { %410 = dma.vmem_to_hbm [thread:$0]  %s405_s27, 256, %s855_s7, [#allocation3], %s656_s23, %s656_s23, %s657_s24  }
 0x2a9   :  { %651 = dma.done.wait [#allocation3], 256  }
 0x2aa   :  { %652 = vsyncadd [#allocation3], 4294967040 }
 0x2ab   :  { %653 = dma.done.wait [#allocation5], 256  }
 0x2ac   :  { %654 = vsyncadd [#allocation5], 4294967040 }
 0x2ad   :  { %429 = vsyncpa [#allocation3], 1 }
 0x2ae   :  { %430 = vsyncpa [#allocation5], 1 }

</bundles_post_ra>
